<compile_context>
chip_gen: v5e
topology: v5e:2x2
jax: 0.10.0
libtpu: 0.0.40
codegen_flags: <defaults>
</compile_context>

<pallas_src>
import functools

import jax
import jax.numpy as jnp
from jax.experimental import pallas as pl
from jax.experimental.pallas import tpu as pltpu

_LANES = 128


def _self_attention_kernel(x_ref, wq_ref, wk_ref, wv_ref, wo_ref, bo_ref, o_ref,
                           *, heads, block_b):
    """One grid step = `block_b` batch elements; per-head work batched on the MXU."""
    bb = block_b
    N = x_ref.shape[1]
    Dp = x_ref.shape[2]
    dh = wq_ref.shape[2]
    R = bb * N                      # rows of the flattened batch-block
    G = heads * bb                  # (head, batch) pairs; g = h * bb + b

    # Flatten the block to 2D rows (leading-dim merge: free), cast to bf16 once,
    # then broadcast over heads so ONE batched dot covers all heads.
    x2 = x_ref[...].reshape(R, Dp).astype(jnp.bfloat16)          # (R, Dp)
    xg = jnp.tile(x2, (heads, 1, 1))                              # (H, R, Dp)

    proj_dims = (((2,), (1,)), ((0,), (0,)))                      # contract Dp, batch H
    q = jax.lax.dot_general(xg, wq_ref[...], proj_dims,
                            preferred_element_type=jnp.float32)   # (H, R, dh)
    k = jax.lax.dot_general(xg, wk_ref[...], proj_dims,
                            preferred_element_type=jnp.float32)
    v = jax.lax.dot_general(xg, wv_ref[...], proj_dims,
                            preferred_element_type=jnp.float32)

    # (H, bb*N, dh) -> (H*bb, N, dh): second-minor dim split, lane dim untouched.
    qg = q.astype(jnp.bfloat16).reshape(G, N, dh)
    kg = k.astype(jnp.bfloat16).reshape(G, N, dh)
    vg = v.astype(jnp.bfloat16).reshape(G, N, dh)

    # Scores: contract dim_head of q with dim_head of k (K-transpose folded in);
    # the softmax scale is already folded into Wq.
    dots = jax.lax.dot_general(qg, kg, (((2,), (2,)), ((0,), (0,))),
                               preferred_element_type=jnp.float32)  # (G, N, N)

    # Numerically stable softmax, kept in f32 (v5e has no bf16 VPU/EUP).
    m = jnp.max(dots, axis=-1, keepdims=True)
    p = jnp.exp(dots - m)
    attn = p * pl.reciprocal(jnp.sum(p, axis=-1, keepdims=True), approx=True)

    out = jax.lax.dot_general(attn.astype(jnp.bfloat16), vg,
                              (((2,), (1,)), ((0,), (0,))),
                              preferred_element_type=jnp.float32)   # (G, N, dh)

    # Output projection: batch over heads, then reduce over the (major) head axis.
    # out @ W_out == sum_h out_h @ W_out[h*dh:(h+1)*dh, :]  (dropout p=0 is identity).
    outh = out.astype(jnp.bfloat16).reshape(heads, R, dh)           # (H, R, dh)
    proj = jax.lax.dot_general(outh, wo_ref[...],
                               (((2,), (1,)), ((0,), (0,))),
                               preferred_element_type=jnp.float32)  # (H, R, Dp)
    y = jnp.sum(proj, axis=0) + bo_ref[...]                         # (R, Dp) f32

    o_ref[...] = y.reshape(bb, N, Dp).astype(o_ref.dtype)


def self_attention(x, w_qkv, w_out, b_out, *, heads, dim_head, block_b=1):
    """
    x      : (B, N, D)                float32
    w_qkv  : (D, 3*heads*dim_head)    (transposed from PyTorch (out, in) layout)
    w_out  : (heads*dim_head, D)      (transposed from PyTorch layout)
    b_out  : (1, D)
    returns: (B, N, D)
    """
    B, N, D = x.shape
    inner = heads * dim_head
    scale = dim_head ** (-0.5)
    assert w_qkv.shape == (D, 3 * inner) and w_out.shape == (inner, D)
    assert B % block_b == 0, "block_b must divide batch"

    Dp = ((D + _LANES - 1) // _LANES) * _LANES    # lane-dense padded feature dim
    pad_d = Dp - D

    # ---------- wrapper-side layout plumbing (free XLA ops) ----------
    # Head-major per-head weights; softmax scale folded into Wq; bf16 residents.
    w3 = w_qkv.reshape(D, 3, heads, dim_head)
    wq = jnp.transpose(w3[:, 0], (1, 0, 2)) * scale        # (heads, D, dh)
    wk = jnp.transpose(w3[:, 1], (1, 0, 2))
    wv = jnp.transpose(w3[:, 2], (1, 0, 2))
    wo = w_out.reshape(heads, dim_head, D)                 # (heads, dh, D)
    bo = b_out.reshape(1, D).astype(jnp.float32)

    x_p = x
    if pad_d:
        x_p = jnp.pad(x, ((0, 0), (0, 0), (0, pad_d)))
        wq = jnp.pad(wq, ((0, 0), (0, pad_d), (0, 0)))
        wk = jnp.pad(wk, ((0, 0), (0, pad_d), (0, 0)))
        wv = jnp.pad(wv, ((0, 0), (0, pad_d), (0, 0)))
        wo = jnp.pad(wo, ((0, 0), (0, 0), (0, pad_d)))
        bo = jnp.pad(bo, ((0, 0), (0, pad_d)))

    wq = wq.astype(jnp.bfloat16)
    wk = wk.astype(jnp.bfloat16)
    wv = wv.astype(jnp.bfloat16)
    wo = wo.astype(jnp.bfloat16)

    kernel = functools.partial(_self_attention_kernel, heads=heads, block_b=block_b)

    out_p = pl.pallas_call(
        kernel,
        out_shape=jax.ShapeDtypeStruct((B, N, Dp), x.dtype),
        grid_spec=pltpu.PrefetchScalarGridSpec(
            num_scalar_prefetch=0,
            grid=(B // block_b,),
            in_specs=[
                pl.BlockSpec((block_b, N, Dp), lambda i: (i, 0, 0)),        # x (streamed)
                pl.BlockSpec((heads, Dp, dim_head), lambda i: (0, 0, 0)),   # Wq (resident)
                pl.BlockSpec((heads, Dp, dim_head), lambda i: (0, 0, 0)),   # Wk
                pl.BlockSpec((heads, Dp, dim_head), lambda i: (0, 0, 0)),   # Wv
                pl.BlockSpec((heads, dim_head, Dp), lambda i: (0, 0, 0)),   # Wo
                pl.BlockSpec((1, Dp), lambda i: (0, 0)),                    # bias
            ],
            out_specs=pl.BlockSpec((block_b, N, Dp), lambda i: (i, 0, 0)),
        ),
        compiler_params=pltpu.CompilerParams(
            dimension_semantics=("parallel",),
            vmem_limit_bytes=32 * 1024 * 1024,
        ),
    )(x_p, wq, wk, wv, wo, bo)

    return out_p[..., :D] if pad_d else out_p


def self_attention_ref(x, w_qkv, w_out, b_out, *, heads, dim_head):
    """Pure-JAX (f32) reference mirroring the PyTorch forward."""
    B, N, D = x.shape
    scale = dim_head ** (-0.5)
    qkv = x @ w_qkv                                        # (B, N, 3*inner)
    q, k, v = jnp.split(qkv, 3, axis=-1)

    def to_heads(t):                                       # 'b n (h d) -> b h n d'
        return t.reshape(B, N, heads, dim_head).transpose(0, 2, 1, 3)

    q, k, v = map(to_heads, (q, k, v))
    dots = jnp.einsum('bhid,bhjd->bhij', q, k) * scale
    attn = jax.nn.softmax(dots, axis=-1)
    out = jnp.einsum('bhij,bhjd->bhid', attn, v)
    out = out.transpose(0, 2, 1, 3).reshape(B, N, heads * dim_head)
    return out @ w_out + b_out                             # dropout(p=0) == identity


if __name__ == "__main__":
    # Small, forward-consistent shapes.
    B, N, D = 2, 8, 32
    heads, dim_head = 4, 16
    inner = heads * dim_head

    key = jax.random.PRNGKey(0)
    kx, kqkv, kw, kb = jax.random.split(key, 4)

    x = jax.random.normal(kx, (B, N, D), dtype=jnp.float32)

    # PyTorch layout is (out, in); store transposed for x @ W.
    w_qkv_pt = jax.random.normal(kqkv, (3 * inner, D), dtype=jnp.float32) * 0.05
    w_out_pt = jax.random.normal(kw, (D, inner), dtype=jnp.float32) * 0.05
    b_out = jax.random.normal(kb, (1, D), dtype=jnp.float32) * 0.05

    w_qkv = w_qkv_pt.T     # (D, 3*inner)
    w_out = w_out_pt.T     # (inner, D)

    out = self_attention(x, w_qkv, w_out, b_out,
                         heads=heads, dim_head=dim_head, block_b=2)
    out = jax.block_until_ready(out)

    ref = self_attention_ref(x, w_qkv, w_out, b_out, heads=heads, dim_head=dim_head)
    assert out.shape == ref.shape, (out.shape, ref.shape)
    max_err = float(jnp.max(jnp.abs(out - ref)))
    # bf16 MXU operands + approx reciprocal vs f32 reference -> loosened tolerance.
    assert jnp.allclose(out, ref, atol=2e-2, rtol=2e-2), f"mismatch, max_err={max_err}"

    print("KERNEL_OK")
</pallas_src>

<mosaic_0001>
module attributes {stable_mosaic.version = 11 : i64} {
  func.func @_self_attention_kernel(%arg0: i32, %arg1: memref<2x8x128xf32, #tpu.memory_space<vmem>>, %arg2: memref<4x128x16xbf16, #tpu.memory_space<vmem>>, %arg3: memref<4x128x16xbf16, #tpu.memory_space<vmem>>, %arg4: memref<4x128x16xbf16, #tpu.memory_space<vmem>>, %arg5: memref<4x16x128xbf16, #tpu.memory_space<vmem>>, %arg6: memref<1x128xf32, #tpu.memory_space<vmem>>, %arg7: memref<2x8x128xf32, #tpu.memory_space<vmem>>) attributes {dimension_semantics = [#tpu.dimension_semantics<parallel>], iteration_bounds = array<i64: 1>, scalar_prefetch = 0 : i64, scratch_operands = 0 : i64, tpu.core_type = #tpu.core_type<tc>, window_params = [{transform_indices = @transform_0, window_bounds = array<i64: 2, 8, 128>}, {pipeline_mode = #tpu.pipeline_mode<synchronous>, transform_indices = @transform_1, window_bounds = array<i64: 4, 128, 16>}, {pipeline_mode = #tpu.pipeline_mode<synchronous>, transform_indices = @transform_2, window_bounds = array<i64: 4, 128, 16>}, {pipeline_mode = #tpu.pipeline_mode<synchronous>, transform_indices = @transform_3, window_bounds = array<i64: 4, 128, 16>}, {pipeline_mode = #tpu.pipeline_mode<synchronous>, transform_indices = @transform_4, window_bounds = array<i64: 4, 16, 128>}, {pipeline_mode = #tpu.pipeline_mode<synchronous>, transform_indices = @transform_5, window_bounds = array<i64: 1, 128>}, {transform_indices = @transform_6, window_bounds = array<i64: 2, 8, 128>}]} {
    %c0 = arith.constant 0 : index
    %c0_0 = arith.constant 0 : index
    %c0_1 = arith.constant 0 : index
    %0 = vector.load %arg1[%c0, %c0_0, %c0_1] : memref<2x8x128xf32, #tpu.memory_space<vmem>>, vector<2x8x128xf32>
    %1 = vector.shape_cast %0 : vector<2x8x128xf32> to vector<16x128xf32>
    %2 = arith.truncf %1 : vector<16x128xf32> to vector<16x128xbf16>
    %3 = vector.shape_cast %2 : vector<16x128xbf16> to vector<1x16x128xbf16>
    %4 = tpu.concatenate %3, %3, %3, %3 in 0 : vector<1x16x128xbf16>, vector<1x16x128xbf16>, vector<1x16x128xbf16>, vector<1x16x128xbf16> -> vector<4x16x128xbf16>
    %c0_2 = arith.constant 0 : index
    %c0_3 = arith.constant 0 : index
    %c0_4 = arith.constant 0 : index
    %5 = vector.load %arg2[%c0_2, %c0_3, %c0_4] : memref<4x128x16xbf16, #tpu.memory_space<vmem>>, vector<4x128x16xbf16>
    %cst = arith.constant dense<0.000000e+00> : vector<4x16x16xf32>
    %6 = tpu.matmul %4, %5, %cst {dimension_numbers = #tpu.dot_dimension_numbers<[2], [1], [1], [2], [0, 0, 0, 1, 1, 2], [0], [0]>} : vector<4x16x128xbf16>, vector<4x128x16xbf16>, vector<4x16x16xf32> -> vector<4x16x16xf32>
    %c0_5 = arith.constant 0 : index
    %c0_6 = arith.constant 0 : index
    %c0_7 = arith.constant 0 : index
    %7 = vector.load %arg3[%c0_5, %c0_6, %c0_7] : memref<4x128x16xbf16, #tpu.memory_space<vmem>>, vector<4x128x16xbf16>
    %cst_8 = arith.constant dense<0.000000e+00> : vector<4x16x16xf32>
    %8 = tpu.matmul %4, %7, %cst_8 {dimension_numbers = #tpu.dot_dimension_numbers<[2], [1], [1], [2], [0, 0, 0, 1, 1, 2], [0], [0]>} : vector<4x16x128xbf16>, vector<4x128x16xbf16>, vector<4x16x16xf32> -> vector<4x16x16xf32>
    %c0_9 = arith.constant 0 : index
    %c0_10 = arith.constant 0 : index
    %c0_11 = arith.constant 0 : index
    %9 = vector.load %arg4[%c0_9, %c0_10, %c0_11] : memref<4x128x16xbf16, #tpu.memory_space<vmem>>, vector<4x128x16xbf16>
    %cst_12 = arith.constant dense<0.000000e+00> : vector<4x16x16xf32>
    %10 = tpu.matmul %4, %9, %cst_12 {dimension_numbers = #tpu.dot_dimension_numbers<[2], [1], [1], [2], [0, 0, 0, 1, 1, 2], [0], [0]>} : vector<4x16x128xbf16>, vector<4x128x16xbf16>, vector<4x16x16xf32> -> vector<4x16x16xf32>
    %11 = arith.truncf %6 : vector<4x16x16xf32> to vector<4x16x16xbf16>
    %12 = vector.shape_cast %11 : vector<4x16x16xbf16> to vector<8x8x16xbf16>
    %13 = arith.truncf %8 : vector<4x16x16xf32> to vector<4x16x16xbf16>
    %14 = vector.shape_cast %13 : vector<4x16x16xbf16> to vector<8x8x16xbf16>
    %15 = arith.truncf %10 : vector<4x16x16xf32> to vector<4x16x16xbf16>
    %16 = vector.shape_cast %15 : vector<4x16x16xbf16> to vector<8x8x16xbf16>
    %cst_13 = arith.constant dense<0.000000e+00> : vector<8x8x8xf32>
    %17 = tpu.matmul %12, %14, %cst_13 {dimension_numbers = #tpu.dot_dimension_numbers<[2], [2], [1], [1], [0, 0, 0, 1, 1, 1], [0], [0]>} : vector<8x8x16xbf16>, vector<8x8x16xbf16>, vector<8x8x8xf32> -> vector<8x8x8xf32>
    %cst_14 = arith.constant dense<0xFF800000> : vector<8x8xf32>
    %18 = vector.multi_reduction <maximumf>, %17, %cst_14 [2] : vector<8x8x8xf32> to vector<8x8xf32>
    %19 = vector.shape_cast %18 : vector<8x8xf32> to vector<8x8x1xf32>
    %20 = vector.broadcast %19 : vector<8x8x1xf32> to vector<8x8x8xf32>
    %21 = arith.subf %17, %20 : vector<8x8x8xf32>
    %22 = math.exp %21 : vector<8x8x8xf32>
    %cst_15 = arith.constant dense<0.000000e+00> : vector<8x8xf32>
    %23 = vector.multi_reduction <add>, %22, %cst_15 [2] : vector<8x8x8xf32> to vector<8x8xf32>
    %24 = vector.shape_cast %23 : vector<8x8xf32> to vector<8x8x1xf32>
    %25 = tpu.reciprocal %24 {approx = true} : vector<8x8x1xf32> -> vector<8x8x1xf32>
    %26 = vector.broadcast %25 : vector<8x8x1xf32> to vector<8x8x8xf32>
    %27 = arith.mulf %22, %26 : vector<8x8x8xf32>
    %28 = arith.truncf %27 : vector<8x8x8xf32> to vector<8x8x8xbf16>
    %cst_16 = arith.constant dense<0.000000e+00> : vector<8x8x16xf32>
    %29 = tpu.matmul %28, %16, %cst_16 {dimension_numbers = #tpu.dot_dimension_numbers<[2], [1], [1], [2], [0, 0, 0, 1, 1, 2], [0], [0]>} : vector<8x8x8xbf16>, vector<8x8x16xbf16>, vector<8x8x16xf32> -> vector<8x8x16xf32>
    %30 = arith.truncf %29 : vector<8x8x16xf32> to vector<8x8x16xbf16>
    %31 = vector.shape_cast %30 : vector<8x8x16xbf16> to vector<4x16x16xbf16>
    %c0_17 = arith.constant 0 : index
    %c0_18 = arith.constant 0 : index
    %c0_19 = arith.constant 0 : index
    %32 = vector.load %arg5[%c0_17, %c0_18, %c0_19] : memref<4x16x128xbf16, #tpu.memory_space<vmem>>, vector<4x16x128xbf16>
    %cst_20 = arith.constant dense<0.000000e+00> : vector<4x16x128xf32>
    %33 = tpu.matmul %31, %32, %cst_20 {dimension_numbers = #tpu.dot_dimension_numbers<[2], [1], [1], [2], [0, 0, 0, 1, 1, 2], [0], [0]>} : vector<4x16x16xbf16>, vector<4x16x128xbf16>, vector<4x16x128xf32> -> vector<4x16x128xf32>
    %cst_21 = arith.constant dense<0.000000e+00> : vector<16x128xf32>
    %34 = vector.multi_reduction <add>, %33, %cst_21 [0] : vector<4x16x128xf32> to vector<16x128xf32>
    %c0_22 = arith.constant 0 : index
    %c0_23 = arith.constant 0 : index
    %35 = vector.load %arg6[%c0_22, %c0_23] : memref<1x128xf32, #tpu.memory_space<vmem>>, vector<1x128xf32>
    %36 = vector.broadcast %35 : vector<1x128xf32> to vector<16x128xf32>
    %37 = arith.addf %34, %36 : vector<16x128xf32>
    %38 = vector.shape_cast %37 : vector<16x128xf32> to vector<2x8x128xf32>
    %c0_24 = arith.constant 0 : index
    %c0_25 = arith.constant 0 : index
    %c0_26 = arith.constant 0 : index
    %39 = vector.load %arg7[%c0_24, %c0_25, %c0_26] : memref<2x8x128xf32, #tpu.memory_space<vmem>>, vector<2x8x128xf32>
    tpu.vector_store %arg7[%c0_24, %c0_25, %c0_26], %38 {strides = array<i32>} : memref<2x8x128xf32, #tpu.memory_space<vmem>>, vector<2x8x128xf32>,
    return
  }
  func.func @transform_0(%arg0: i32) -> (i32, i32, i32) {
    %c0_i32 = arith.constant 0 : i32
    %c0_i32_0 = arith.constant 0 : i32
    %c0_i32_1 = arith.constant 0 : i32
    return %arg0, %c0_i32, %c0_i32_0 : i32, i32, i32
  }
  func.func @transform_1(%arg0: i32) -> (i32, i32, i32) {
    %c0_i32 = arith.constant 0 : i32
    %c0_i32_0 = arith.constant 0 : i32
    %c0_i32_1 = arith.constant 0 : i32
    %c0_i32_2 = arith.constant 0 : i32
    return %c0_i32, %c0_i32_0, %c0_i32_1 : i32, i32, i32
  }
  func.func @transform_2(%arg0: i32) -> (i32, i32, i32) {
    %c0_i32 = arith.constant 0 : i32
    %c0_i32_0 = arith.constant 0 : i32
    %c0_i32_1 = arith.constant 0 : i32
    %c0_i32_2 = arith.constant 0 : i32
    return %c0_i32, %c0_i32_0, %c0_i32_1 : i32, i32, i32
  }
  func.func @transform_3(%arg0: i32) -> (i32, i32, i32) {
    %c0_i32 = arith.constant 0 : i32
    %c0_i32_0 = arith.constant 0 : i32
    %c0_i32_1 = arith.constant 0 : i32
    %c0_i32_2 = arith.constant 0 : i32
    return %c0_i32, %c0_i32_0, %c0_i32_1 : i32, i32, i32
  }
  func.func @transform_4(%arg0: i32) -> (i32, i32, i32) {
    %c0_i32 = arith.constant 0 : i32
    %c0_i32_0 = arith.constant 0 : i32
    %c0_i32_1 = arith.constant 0 : i32
    %c0_i32_2 = arith.constant 0 : i32
    return %c0_i32, %c0_i32_0, %c0_i32_1 : i32, i32, i32
  }
  func.func @transform_5(%arg0: i32) -> (i32, i32) {
    %c0_i32 = arith.constant 0 : i32
    %c0_i32_0 = arith.constant 0 : i32
    %c0_i32_1 = arith.constant 0 : i32
    return %c0_i32, %c0_i32_0 : i32, i32
  }
  func.func @transform_6(%arg0: i32) -> (i32, i32, i32) {
    %c0_i32 = arith.constant 0 : i32
    %c0_i32_0 = arith.constant 0 : i32
    %c0_i32_1 = arith.constant 0 : i32
    return %arg0, %c0_i32, %c0_i32_0 : i32, i32, i32
  }
}

</mosaic_0001>

<bundles_post_ra>
// kernel: tpu_custom_call.1
= control target key start
LH: loop header
LB: loop body
LE: loop exit
PB: predicated region body
PF: predicated region fallthrough
CT: control target
= control target key end

     0   :  { %s2556_s0 = inlined_call_operand.vmem [shape: f32[2,8,128], index: 0, kind: input, shape index: {}]   ;;  %s2557_s1 = inlined_call_operand.vmem [shape: bf16[4,128,16], index: 1, kind: input, shape index: {}]   ;;  %s2558_s2 = inlined_call_operand.vmem [shape: bf16[4,128,16], index: 2, kind: input, shape index: {}]   ;;  %s2559_s3 = inlined_call_operand.vmem [shape: bf16[4,128,16], index: 3, kind: input, shape index: {}]   ;;  %s2560_s4 = inlined_call_operand.vmem [shape: bf16[4,16,128], index: 4, kind: input, shape index: {}]   ;;  %s2561_s5 = inlined_call_operand.vmem [shape: f32[1,128], index: 5, kind: input, shape index: {}]   ;;  %s2562_s6 = inlined_call_operand.hbm [shape: f32[2,8,128], index: 6, kind: output, shape index: {}]  }
   0x1   :  { %v1985_v0 = vld [vmem:[%s2557_s1 + $0x38] sm:$0xff]  ;;  %v1984_v3 = vld [vmem:[%s2557_s1 + $0x30] sm:$0xff]  ;;  %v1983_v8 = vld [vmem:[%s2557_s1 + $0x28] sm:$0xff] }
   0x2   :  { %v1993_v1 = vld [vmem:[%s2557_s1 + $0x78] sm:$0xff]  ;;  %147 = vmatpush.bf16.msra.mxu0 %v1985_v0  ;;  %v1992_v4 = vld [vmem:[%s2557_s1 + $0x70] sm:$0xff]  ;;  %v1991_v9 = vld [vmem:[%s2557_s1 + $0x68] sm:$0xff] }
   0x3   :  { %v2009_v2 = vld [vmem:[%s2557_s1 + $0xf8] sm:$0xff]  ;;  %209 = vmatpush.bf16.msra.mxu1 %v1993_v1  ;;  %v2008_v6 = vld [vmem:[%s2557_s1 + $0xf0] sm:$0xff]  ;;  %v2007_v10 = vld [vmem:[%s2557_s1 + $0xe8] sm:$0xff] }
   0x4   :  { %v2001_v5 = vld [vmem:[%s2557_s1 + $0xb8] sm:$0xff]  ;;  %333 = vmatpush.bf16.msra.mxu3 %v2009_v2  ;;  %v2000_v7 = vld [vmem:[%s2557_s1 + $0xb0] sm:$0xff]  ;;  %v1999_v11 = vld [vmem:[%s2557_s1 + $0xa8] sm:$0xff] }
   0x5   :  { %271 = vmatpush.bf16.msra.mxu2 %v2001_v5  ;;  %v1982_v12 = vld [vmem:[%s2557_s1 + $0x20] sm:$0xff]  ;;  %v1981_v16 = vld [vmem:[%s2557_s1 + $0x18] sm:$0xff]  ;;  %v1980_v20 = vld [vmem:[%s2557_s1 + $0x10] sm:$0xff] }
   0x6   :  { %148 = vmatpush.bf16.msra.mxu0 %v1984_v3  ;;  %v1990_v13 = vld [vmem:[%s2557_s1 + $0x60] sm:$0xff]  ;;  %v1989_v17 = vld [vmem:[%s2557_s1 + $0x58] sm:$0xff]  ;;  %v1988_v21 = vld [vmem:[%s2557_s1 + $0x50] sm:$0xff] }
   0x7   :  { %210 = vmatpush.bf16.msra.mxu1 %v1992_v4  ;;  %v2006_v14 = vld [vmem:[%s2557_s1 + $0xe0] sm:$0xff]  ;;  %v2005_v18 = vld [vmem:[%s2557_s1 + $0xd8] sm:$0xff]  ;;  %v26_v23 = vld [vmem:[%s2556_s0 + $0x8] sm:$0xff] }
   0x8   :  { %334 = vmatpush.bf16.msra.mxu3 %v2008_v6  ;;  %v1998_v15 = vld [vmem:[%s2557_s1 + $0xa0] sm:$0xff]  ;;  %v1997_v19 = vld [vmem:[%s2557_s1 + $0x98] sm:$0xff] }
   0x9   :  { %272 = vmatpush.bf16.msra.mxu2 %v2000_v7  ;;  %v25_v22 = vld [vmem:[%s2556_s0] sm:$0xff] }
   0xa   :  { %149 = vmatpush.bf16.msra.mxu0 %v1983_v8 }
   0xb   :  { %211 = vmatpush.bf16.msra.mxu1 %v1991_v9 }
   0xc   :  { %335 = vmatpush.bf16.msra.mxu3 %v2007_v10 }
   0xd   :  { %273 = vmatpush.bf16.msra.mxu2 %v1999_v11 }
   0xe   :  { %150 = vmatpush.bf16.msra.mxu0 %v1982_v12 }
   0xf   :  { %212 = vmatpush.bf16.msra.mxu1 %v1990_v13 }
  0x10   :  { %336 = vmatpush.bf16.msra.mxu3 %v2006_v14 }
  0x11   :  { %274 = vmatpush.bf16.msra.mxu2 %v1998_v15 }
  0x12   :  { %151 = vmatpush.bf16.msra.mxu0 %v1981_v16 }
  0x13   :  { %213 = vmatpush.bf16.msra.mxu1 %v1989_v17 }
  0x14   :  { %11 = vsyncpa [#allocation3], 0  ;;  %337 = vmatpush.bf16.msra.mxu3 %v2005_v18  ;;  %v2004_v24 = vld [vmem:[%s2557_s1 + $0xd0] sm:$0xff]  ;;  %v27_v26 = vpack.c.bf16 %v25_v22, %v25_v22  ;;  %v28_v27 = vpack.c.bf16 %v26_v23, %v26_v23  ;;  %v1979_v28 = vld [vmem:[%s2557_s1 + $0x8] sm:$0xff]  ;;  %vm995_vm0 = vcmask 130048   ;;  %vm1248_vm1 = vcmask 1043456  }
  0x15   :  { %275 = vmatpush.bf16.msra.mxu2 %v1997_v19  ;;  %v1996_v25 = vld [vmem:[%s2557_s1 + $0x90] sm:$0xff]  ;;  %v1987_v29 = vld [vmem:[%s2557_s1 + $0x48] sm:$0xff]  ;;  %v1978_v34 = vld [vmem:[%s2557_s1] sm:$0xff]  ;;  %vm1148_vm2 = vcmask 64512   ;;  %s2140_s19 = smov [#allocation2]   ;;  %s1546_s23 = sshll.u32 %s2562_s6, 4  ;;  %s1547_s23 = int_to_ptr.hbm [resolvable:$true] %s1546_s23 }
  0x16   :  { %152 = vmatpush.bf16.msra.mxu0 %v1980_v20  ;;  %v2003_v30 = vld [vmem:[%s2557_s1 + $0xc8] sm:$0xff]  ;;  %v95_v32 = vunpack.c.l.b16 %v27_v26  ;;  %v96_v33 = vunpack.c.l.b16 %v28_v27  ;;  %v1986_v35 = vld [vmem:[%s2557_s1 + $0x40] sm:$0xff]  ;;  %v2017_v36 = vld [vmem:[%s2558_s2 + $0x38] sm:$0xff]  ;;  %s1544_s20 = sshll.u32 %s2140_s19, 4  ;;  %s2142_s24 = smov 8   ;;  %s1545_s20 = int_to_ptr.vmem [resolvable:$true] %s1544_s20 }
  0x17   :  { %214 = vmatpush.bf16.msra.mxu1 %v1988_v21  ;;  %v1995_v31 = vld [vmem:[%s2557_s1 + $0x88] sm:$0xff]  ;;  %v2025_v37 = vld [vmem:[%s2558_s2 + $0x78] sm:$0xff]  ;;  %v2002_v38 = vld [vmem:[%s2557_s1 + $0xc0] sm:$0xff] }
  0x18   :  { %338 = vmatpush.bf16.msra.mxu3 %v2004_v24  ;;  %v1994_v39 = vld [vmem:[%s2557_s1 + $0x80] sm:$0xff]  ;;  %v2041_v40 = vld [vmem:[%s2558_s2 + $0xf8] sm:$0xff]  ;;  %v2289_v41 = vpack.c.b16 %v96_v33, %v95_v32  ;;  %v2016_v43 = vld [vmem:[%s2558_s2 + $0x30] sm:$0xff] }
  0x19   :  { %276 = vmatpush.bf16.msra.mxu2 %v1996_v25  ;;  %v2033_v42 = vld [vmem:[%s2558_s2 + $0xb8] sm:$0xff]  ;;  %v2024_v44 = vld [vmem:[%s2558_s2 + $0x70] sm:$0xff]  ;;  %v2015_v47 = vld [vmem:[%s2558_s2 + $0x28] sm:$0xff] }
  0x1a   :  { %153 = vmatpush.bf16.msra.mxu0 %v1979_v28  ;;  %v2040_v45 = vld [vmem:[%s2558_s2 + $0xf0] sm:$0xff]  ;;  %v2023_v48 = vld [vmem:[%s2558_s2 + $0x68] sm:$0xff]  ;;  %v2014_v51 = vld [vmem:[%s2558_s2 + $0x20] sm:$0xff] }
  0x1b   :  { %215 = vmatpush.bf16.msra.mxu1 %v1987_v29  ;;  %v2032_v46 = vld [vmem:[%s2558_s2 + $0xb0] sm:$0xff]  ;;  %v2039_v49 = vld [vmem:[%s2558_s2 + $0xe8] sm:$0xff]  ;;  %v2022_v52 = vld [vmem:[%s2558_s2 + $0x60] sm:$0xff] }
  0x1c   :  { %339 = vmatpush.bf16.msra.mxu3 %v2003_v30  ;;  %v2031_v50 = vld [vmem:[%s2558_s2 + $0xa8] sm:$0xff]  ;;  %v2038_v53 = vld [vmem:[%s2558_s2 + $0xe0] sm:$0xff]  ;;  %v2013_v55 = vld [vmem:[%s2558_s2 + $0x18] sm:$0xff] }
  0x1d   :  { %277 = vmatpush.bf16.msra.mxu2 %v1995_v31  ;;  %v2030_v54 = vld [vmem:[%s2558_s2 + $0xa0] sm:$0xff]  ;;  %v2021_v56 = vld [vmem:[%s2558_s2 + $0x58] sm:$0xff]  ;;  %v2012_v59 = vld [vmem:[%s2558_s2 + $0x10] sm:$0xff] }
  0x1e   :  { %154 = vmatpush.bf16.msra.mxu0 %v1978_v34  ;;  %v2037_v57 = vld [vmem:[%s2558_s2 + $0xd8] sm:$0xff]  ;;  %v2020_v60 = vld [vmem:[%s2558_s2 + $0x50] sm:$0xff]  ;;  %v2011_v63 = vld [vmem:[%s2558_s2 + $0x8] sm:$0xff] }
  0x1f   :  { %216 = vmatpush.bf16.msra.mxu1 %v1986_v35  ;;  %v2029_v58 = vld [vmem:[%s2558_s2 + $0x98] sm:$0xff]  ;;  %v2036_v61 = vld [vmem:[%s2558_s2 + $0xd0] sm:$0xff]  ;;  %v2019_v0 = vld [vmem:[%s2558_s2 + $0x48] sm:$0xff] }
  0x20   :  { %340 = vmatpush.bf16.msra.mxu3 %v2002_v38  ;;  %v2028_v62 = vld [vmem:[%s2558_s2 + $0x90] sm:$0xff]  ;;  %v2035_v1 = vld [vmem:[%s2558_s2 + $0xc8] sm:$0xff]  ;;  %v2010_v3 = vld [vmem:[%s2558_s2] sm:$0xff] }
  0x21   :  { %278 = vmatpush.bf16.msra.mxu2 %v1994_v39  ;;  %155 = vmatmul.bf16.vlgmr.msra.gmra.mxu0 %v2289_v41  ;;  %v2027_v2 = vld [vmem:[%s2558_s2 + $0x88] sm:$0xff]  ;;  %v2018_v4 = vld [vmem:[%s2558_s2 + $0x40] sm:$0xff]  ;;  %v2049_v5 = vld [vmem:[%s2559_s3 + $0x38] sm:$0xff] }
  0x22   :  { %459 = vmatpush.bf16.msrb.mxu0 %v2017_v36  ;;  %217 = vmatmul.bf16.vlgmr.msra.gmra.mxu1 %v2289_v41  ;;  %v2057_v6 = vld [vmem:[%s2559_s3 + $0x78] sm:$0xff]  ;;  %v2034_v7 = vld [vmem:[%s2558_s2 + $0xc0] sm:$0xff]  ;;  %v2048_v11 = vld [vmem:[%s2559_s3 + $0x30] sm:$0xff] }
  0x23   :  { %521 = vmatpush.bf16.msrb.mxu1 %v2025_v37  ;;  %341 = vmatmul.bf16.vlgmr.msra.gmra.mxu3 %v2289_v41  ;;  %v2026_v8 = vld [vmem:[%s2558_s2 + $0x80] sm:$0xff]  ;;  %v2073_v9 = vld [vmem:[%s2559_s3 + $0xf8] sm:$0xff]  ;;  %v2064_v12 = vld [vmem:[%s2559_s3 + $0xb0] sm:$0xff] }
  0x24   :  { %645 = vmatpush.bf16.msrb.mxu3 %v2041_v40  ;;  %279 = vmatmul.bf16.vlgmr.msra.gmra.mxu2 %v2289_v41  ;;  %v2065_v10 = vld [vmem:[%s2559_s3 + $0xb8] sm:$0xff]  ;;  %v2047_v13 = vld [vmem:[%s2559_s3 + $0x28] sm:$0xff]  ;;  %v2062_v15 = vld [vmem:[%s2559_s3 + $0xa0] sm:$0xff] }
  0x25   :  { %583 = vmatpush.bf16.msrb.mxu2 %v2033_v42  ;;  %v2063_v14 = vld [vmem:[%s2559_s3 + $0xa8] sm:$0xff]  ;;  %v2072_v16 = vld [vmem:[%s2559_s3 + $0xf0] sm:$0xff]  ;;  %v2061_v17 = vld [vmem:[%s2559_s3 + $0x98] sm:$0xff] }
  0x26   :  { %460 = vmatpush.bf16.msrb.mxu0 %v2016_v43  ;;  %v2071_v18 = vld [vmem:[%s2559_s3 + $0xe8] sm:$0xff]  ;;  %v2046_v19 = vld [vmem:[%s2559_s3 + $0x20] sm:$0xff]  ;;  %v2056_v20 = vld [vmem:[%s2559_s3 + $0x70] sm:$0xff] }
  0x27   :  { %522 = vmatpush.bf16.msrb.mxu1 %v2024_v44  ;;  %v2045_v21 = vld [vmem:[%s2559_s3 + $0x18] sm:$0xff]  ;;  %v2055_v22 = vld [vmem:[%s2559_s3 + $0x68] sm:$0xff]  ;;  %v2060_v23 = vld [vmem:[%s2559_s3 + $0x90] sm:$0xff] }
  0x28   :  { %646 = vmatpush.bf16.msrb.mxu3 %v2040_v45  ;;  %v2070_v24 = vld [vmem:[%s2559_s3 + $0xe0] sm:$0xff]  ;;  %v2059_v25 = vld [vmem:[%s2559_s3 + $0x88] sm:$0xff]  ;;  %v2069_v26 = vld [vmem:[%s2559_s3 + $0xd8] sm:$0xff] }
  0x29   :  { %584 = vmatpush.bf16.msrb.mxu2 %v2032_v46  ;;  %v2044_v27 = vld [vmem:[%s2559_s3 + $0x10] sm:$0xff]  ;;  %v2054_v28 = vld [vmem:[%s2559_s3 + $0x60] sm:$0xff]  ;;  %v2043_v29 = vld [vmem:[%s2559_s3 + $0x8] sm:$0xff] }
  0x2a   :  { %461 = vmatpush.bf16.msrb.mxu0 %v2015_v47  ;;  %v2053_v30 = vld [vmem:[%s2559_s3 + $0x58] sm:$0xff]  ;;  %v2058_v31 = vld [vmem:[%s2559_s3 + $0x80] sm:$0xff]  ;;  %v2068_v32 = vld [vmem:[%s2559_s3 + $0xd0] sm:$0xff] }
  0x2b   :  { %523 = vmatpush.bf16.msrb.mxu1 %v2023_v48  ;;  %v2067_v33 = vld [vmem:[%s2559_s3 + $0xc8] sm:$0xff]  ;;  %v2042_v34 = vld [vmem:[%s2559_s3] sm:$0xff]  ;;  %v2052_v35 = vld [vmem:[%s2559_s3 + $0x50] sm:$0xff] }
  0x2c   :  { %647 = vmatpush.bf16.msrb.mxu3 %v2039_v49  ;;  %v2051_v36 = vld [vmem:[%s2559_s3 + $0x48] sm:$0xff]  ;;  %v2066_v37 = vld [vmem:[%s2559_s3 + $0xc0] sm:$0xff] }
  0x2d   :  { %585 = vmatpush.bf16.msrb.mxu2 %v2031_v50  ;;  %v2050_v38 = vld [vmem:[%s2559_s3 + $0x40] sm:$0xff] }
  0x2e   :  { %462 = vmatpush.bf16.msrb.mxu0 %v2014_v51 }
  0x2f   :  { %524 = vmatpush.bf16.msrb.mxu1 %v2022_v52 }
  0x30   :  { %648 = vmatpush.bf16.msrb.mxu3 %v2038_v53 }
  0x31   :  { %586 = vmatpush.bf16.msrb.mxu2 %v2030_v54 }
  0x32   :  { %463 = vmatpush.bf16.msrb.mxu0 %v2013_v55 }
  0x33   :  { %525 = vmatpush.bf16.msrb.mxu1 %v2021_v56 }
  0x34   :  { %649 = vmatpush.bf16.msrb.mxu3 %v2037_v57 }
  0x35   :  { %587 = vmatpush.bf16.msrb.mxu2 %v2029_v58 }
  0x36   :  { %464 = vmatpush.bf16.msrb.mxu0 %v2012_v59 }
  0x37   :  { %526 = vmatpush.bf16.msrb.mxu1 %v2020_v60 }
  0x38   :  { %650 = vmatpush.bf16.msrb.mxu3 %v2036_v61 }
  0x39   :  { %588 = vmatpush.bf16.msrb.mxu2 %v2028_v62 }
  0x3a   :  { %465 = vmatpush.bf16.msrb.mxu0 %v2011_v63 }
  0x3b   :  { %527 = vmatpush.bf16.msrb.mxu1 %v2019_v0 }
  0x3c   :  { %651 = vmatpush.bf16.msrb.mxu3 %v2035_v1 }
  0x3d   :  { %589 = vmatpush.bf16.msrb.mxu2 %v2027_v2 }
  0x3e   :  { %466 = vmatpush.bf16.msrb.mxu0 %v2010_v3 }
  0x3f   :  { %528 = vmatpush.bf16.msrb.mxu1 %v2018_v4 }
  0x40   :  { %652 = vmatpush.bf16.msrb.mxu3 %v2034_v7 }
  0x41   :  { %467 = vmatmul.bf16.vlgmr.msrb.gmra.mxu0 %v2289_v41  ;;  %590 = vmatpush.bf16.msrb.mxu2 %v2026_v8 }
  0x42   :  { %771 = vmatpush.bf16.msra.mxu0 %v2049_v5  ;;  %529 = vmatmul.bf16.vlgmr.msrb.gmra.mxu1 %v2289_v41 }
  0x43   :  { %833 = vmatpush.bf16.msra.mxu1 %v2057_v6  ;;  %653 = vmatmul.bf16.vlgmr.msrb.gmra.mxu3 %v2289_v41 }
  0x44   :  { %957 = vmatpush.bf16.msra.mxu3 %v2073_v9  ;;  %591 = vmatmul.bf16.vlgmr.msrb.gmra.mxu2 %v2289_v41 }
  0x45   :  { %895 = vmatpush.bf16.msra.mxu2 %v2065_v10 }
  0x46   :  { %772 = vmatpush.bf16.msra.mxu0 %v2048_v11 }
  0x47   :  { %834 = vmatpush.bf16.msra.mxu1 %v2056_v20 }
  0x48   :  { %958 = vmatpush.bf16.msra.mxu3 %v2072_v16 }
  0x49   :  { %896 = vmatpush.bf16.msra.mxu2 %v2064_v12 }
  0x4a   :  { %773 = vmatpush.bf16.msra.mxu0 %v2047_v13 }
  0x4b   :  { %835 = vmatpush.bf16.msra.mxu1 %v2055_v22 }
  0x4c   :  { %959 = vmatpush.bf16.msra.mxu3 %v2071_v18 }
  0x4d   :  { %897 = vmatpush.bf16.msra.mxu2 %v2063_v14 }
  0x4e   :  { %774 = vmatpush.bf16.msra.mxu0 %v2046_v19 }
  0x4f   :  { %836 = vmatpush.bf16.msra.mxu1 %v2054_v28 }
  0x50   :  { %960 = vmatpush.bf16.msra.mxu3 %v2070_v24 }
  0x51   :  { %898 = vmatpush.bf16.msra.mxu2 %v2062_v15 }
  0x52   :  { %775 = vmatpush.bf16.msra.mxu0 %v2045_v21 }
  0x53   :  { %837 = vmatpush.bf16.msra.mxu1 %v2053_v30 }
  0x54   :  { %961 = vmatpush.bf16.msra.mxu3 %v2069_v26 }
  0x55   :  { %899 = vmatpush.bf16.msra.mxu2 %v2061_v17 }
  0x56   :  { %776 = vmatpush.bf16.msra.mxu0 %v2044_v27 }
  0x57   :  { %838 = vmatpush.bf16.msra.mxu1 %v2052_v35 }
  0x58   :  { %962 = vmatpush.bf16.msra.mxu3 %v2068_v32 }
  0x59   :  { %900 = vmatpush.bf16.msra.mxu2 %v2060_v23 }
  0x5a   :  { %777 = vmatpush.bf16.msra.mxu0 %v2043_v29 }
  0x5b   :  { %839 = vmatpush.bf16.msra.mxu1 %v2051_v36 }
  0x5c   :  { %963 = vmatpush.bf16.msra.mxu3 %v2067_v33 }
  0x5d   :  { %901 = vmatpush.bf16.msra.mxu2 %v2059_v25 }
  0x5e   :  { %778 = vmatpush.bf16.msra.mxu0 %v2042_v34 }
  0x5f   :  { %840 = vmatpush.bf16.msra.mxu1 %v2050_v38 }
  0x60   :  { %964 = vmatpush.bf16.msra.mxu3 %v2066_v37 }
  0x61   :  { %902 = vmatpush.bf16.msra.mxu2 %v2058_v31  ;;  %779 = vmatmul.bf16.vlgmr.msra.gmra.mxu0 %v2289_v41 }
  0x62   :  { %841 = vmatmul.bf16.vlgmr.msra.gmra.mxu1 %v2289_v41 }
  0x63   :  { %965 = vmatmul.bf16.vlgmr.msra.gmra.mxu3 %v2289_v41 }
  0x64   :  { %903 = vmatmul.bf16.vlgmr.msra.gmra.mxu2 %v2289_v41 }
  0x9e   :  { %v156_v39 = vpop.f32.mrf.mxu0 }
  0x9f   :  { %v218_v40 = vpop.f32.mrf.mxu1  ;;  %v971_v56 = vpack.c.bf16 %v156_v39, %v156_v39 }
  0xa0   :  { %v973_v55 = vpack.c.bf16 %v218_v40, %v218_v40 }
  0xa6   :  { %v342_v42 = vpop.f32.mrf.mxu3  ;;  %v158_v44 = vpop.f32.mrf.mxu0 }
  0xa7   :  { %v280_v43 = vpop.f32.mrf.mxu2  ;;  %v220_v45 = vpop.f32.mrf.mxu1  ;;  %v972_v4 = vpack.c.bf16 %v158_v44, %v158_v44  ;;  %v977_v11 = vpack.c.bf16 %v342_v42, %v342_v42 }
  0xa8   :  { %v974_v3 = vpack.c.bf16 %v220_v45, %v220_v45  ;;  %v975_v12 = vpack.c.bf16 %v280_v43, %v280_v43 }
  0xae   :  { %v344_v46 = vpop.f32.mrf.mxu3 }
  0xaf   :  { %v282_v47 = vpop.f32.mrf.mxu2  ;;  %v978_v13 = vpack.c.bf16 %v344_v46, %v344_v46 }
  0xb0   :  { %v976_v14 = vpack.c.bf16 %v282_v47, %v282_v47 }
  0xbe   :  { %v468_v48 = vpop.f32.mrf.mxu0 }
  0xbf   :  { %v530_v49 = vpop.f32.mrf.mxu1  ;;  %v979_v50 = vpack.c.bf16 %v468_v48, %v468_v48 }
  0xc0   :  { %v981_v51 = vpack.c.bf16 %v530_v49, %v530_v49 }
  0xc1   :  { %v1000_v52 = vsel %vm995_vm0, %v979_v50, 0 }
  0xc2   :  { %v1038_v53 = vsel %vm995_vm0, %v981_v51, 0  ;;  %1009 = vmatpush.bf16.xpose.msrb.mxu0 %v1000_v52 }
  0xc3   :  { %1047 = vmatpush.bf16.xpose.msrb.mxu2 %v1038_v53 }
  0xc6   :  { %v470_v41 = vpop.f32.mrf.mxu0  ;;  %v654_v59 = vpop.f32.mrf.mxu3 }
  0xc7   :  { %v532_v54 = vpop.f32.mrf.mxu1  ;;  %v980_v57 = vpack.c.bf16 %v470_v41, %v470_v41  ;;  %v985_v60 = vpack.c.bf16 %v654_v59, %v654_v59  ;;  %v592_v61 = vpop.f32.mrf.mxu2 }
  0xc8   :  { %v982_v58 = vpack.c.bf16 %v532_v54, %v532_v54  ;;  %v983_v0 = vpack.c.bf16 %v592_v61, %v592_v61 }
  0xc9   :  { %v1019_v62 = vsel %vm995_vm0, %v980_v57, 0  ;;  %1942 = vmatmul.msk.bf16.vlgmr.msrb.gmra.mxu0 %vm995_vm0, %v971_v56  ;;  %v1114_v1 = vsel %vm995_vm0, %v985_v60, 0 }
  0xca   :  { %v1057_v63 = vsel %vm995_vm0, %v982_v58, 0  ;;  %1944 = vmatmul.msk.bf16.vlgmr.msrb.gmra.mxu2 %vm995_vm0, %v973_v55  ;;  %1028 = vmatpush.bf16.xpose.msrb.mxu1 %v1019_v62  ;;  %v1076_v2 = vsel %vm995_vm0, %v983_v0, 0 }
  0xcb   :  { %1066 = vmatpush.bf16.xpose.msrb.mxu3 %v1057_v63  ;;  %1123 = vmatpush.bf16.xpose.msra.mxu2 %v1114_v1 }
  0xcc   :  { %1085 = vmatpush.bf16.xpose.msra.mxu0 %v1076_v2 }
  0xce   :  { %v656_v5 = vpop.f32.mrf.mxu3 }
  0xcf   :  { %v986_v6 = vpack.c.bf16 %v656_v5, %v656_v5  ;;  %v594_v7 = vpop.f32.mrf.mxu2 }
  0xd0   :  { %v984_v8 = vpack.c.bf16 %v594_v7, %v594_v7 }
  0xd1   :  { %1943 = vmatmul.msk.bf16.vlgmr.msrb.gmra.mxu1 %vm995_vm0, %v972_v4  ;;  %v1133_v9 = vsel %vm995_vm0, %v986_v6, 0 }
  0xd2   :  { %1945 = vmatmul.msk.bf16.vlgmr.msrb.gmra.mxu3 %vm995_vm0, %v974_v3  ;;  %v1095_v10 = vsel %vm995_vm0, %v984_v8, 0 }
  0xd3   :  { %1142 = vmatpush.bf16.xpose.msra.mxu3 %v1133_v9  ;;  %1104 = vmatpush.bf16.xpose.msra.mxu1 %v1095_v10 }
  0xd9   :  { %1946 = vmatmul.msk.bf16.vlgmr.msra.gmra.mxu0 %vm995_vm0, %v975_v12 }
  0xda   :  { %1948 = vmatmul.msk.bf16.vlgmr.msra.gmra.mxu2 %vm995_vm0, %v977_v11 }
  0xde   :  { %v780_v15 = vpop.f32.mrf.mxu0 }
  0xdf   :  { %v987_v16 = vpack.c.bf16 %v780_v15, %v780_v15  ;;  %v842_v22 = vpop.f32.mrf.mxu1 }
  0xe0   :  { %v989_v24 = vpack.c.bf16 %v842_v22, %v842_v22 }
  0xe1   :  { %1947 = vmatmul.msk.bf16.vlgmr.msra.gmra.mxu1 %vm995_vm0, %v976_v14  ;;  %v1250_v19 = vsel %vm1248_vm1, %v987_v16, 0 }
  0xe2   :  { %1949 = vmatmul.msk.bf16.vlgmr.msra.gmra.mxu3 %vm995_vm0, %v978_v13  ;;  %1259 = vmatpush.bf16.msrb.mxu0 %v1250_v19  ;;  %v1288_v30 = vsel %vm1248_vm1, %v989_v24, 0 }
  0xe3   :  { %1297 = vmatpush.bf16.msrb.mxu2 %v1288_v30 }
  0xe6   :  { %v782_v21 = vpop.f32.mrf.mxu0  ;;  %v966_v26 = vpop.f32.mrf.mxu3 }
  0xe7   :  { %v904_v17 = vpop.f32.mrf.mxu2  ;;  %v988_v23 = vpack.c.bf16 %v782_v21, %v782_v21  ;;  %v993_v28 = vpack.c.bf16 %v966_v26, %v966_v26  ;;  %v844_v33 = vpop.f32.mrf.mxu1 }
  0xe8   :  { %v991_v18 = vpack.c.bf16 %v904_v17, %v904_v17  ;;  %v990_v34 = vpack.c.bf16 %v844_v33, %v844_v33 }
  0xe9   :  { %v1269_v29 = vsel %vm1248_vm1, %v988_v23, 0  ;;  %v1364_v32 = vsel %vm1248_vm1, %v993_v28, 0 }
  0xea   :  { %v1326_v20 = vsel %vm1248_vm1, %v991_v18, 0  ;;  %1278 = vmatpush.bf16.msrb.mxu1 %v1269_v29  ;;  %1373 = vmatpush.bf16.msra.mxu2 %v1364_v32  ;;  %v1307_v36 = vsel %vm1248_vm1, %v990_v34, 0 }
  0xeb   :  { %1335 = vmatpush.bf16.msra.mxu0 %v1326_v20  ;;  %1316 = vmatpush.bf16.msrb.mxu3 %v1307_v36 }
  0xee   :  { %v968_v35 = vpop.f32.mrf.mxu3 }
  0xef   :  { %v906_v25 = vpop.f32.mrf.mxu2  ;;  %v994_v37 = vpack.c.bf16 %v968_v35, %v968_v35 }
  0xf0   :  { %v992_v27 = vpack.c.bf16 %v906_v25, %v906_v25 }
  0xf1   :  { %v1383_v38 = vsel %vm1248_vm1, %v994_v37, 0 }
  0xf2   :  { %v1345_v31 = vsel %vm1248_vm1, %v992_v27, 0  ;;  %1392 = vmatpush.bf16.msra.mxu3 %v1383_v38 }
  0xf3   :  { %1354 = vmatpush.bf16.msra.mxu1 %v1345_v31 }
 0x146   :  { %v1011_v39 = vpop.f32.mrf.mxu0 }
 0x147   :  { %v1149_v40 = vsel %vm1148_vm2, %v1011_v39, -inf }
 0x148   :  { %1150 = vmax.xlane.f32.xlu1 %v1149_v40 }
 0x14d   :  { %v1049_v42 = vpop.f32.mrf.mxu2 }
 0x14e   :  { %v1155_v43 = vsel %vm1148_vm2, %v1049_v42, -inf  ;;  %v1013_v44 = vpop.f32.mrf.mxu0  ;;  %v1030_v45 = vpop.f32.mrf.mxu1 }
 0x14f   :  { %1156 = vmax.xlane.f32.xlu0 %v1155_v43  ;;  %v1152_v46 = vsel %vm1148_vm2, %v1030_v45, -inf }
 0x150   :  { %1153 = vmax.xlane.f32.xlu1 %v1152_v46 }
 0x155   :  { %v1051_v47 = vpop.f32.mrf.mxu2  ;;  %v1068_v48 = vpop.f32.mrf.mxu3 }
 0x156   :  { %v1158_v49 = vsel %vm1148_vm2, %v1068_v48, -inf  ;;  %v1032_v50 = vpop.f32.mrf.mxu1  ;;  %v1087_v51 = vpop.f32.mrf.mxu0 }
 0x157   :  { %1159 = vmax.xlane.f32.xlu0 %v1158_v49  ;;  %v1161_v54 = vsel %vm1148_vm2, %v1087_v51, -inf }
 0x15d   :  { %v1070_v52 = vpop.f32.mrf.mxu3  ;;  %v1125_v53 = vpop.f32.mrf.mxu2 }
 0x15e   :  { %v1167_v41 = vsel %vm1148_vm2, %v1125_v53, -inf  ;;  %v1106_v55 = vpop.f32.mrf.mxu1  ;;  %v1089_v56 = vpop.f32.mrf.mxu0 }
 0x15f   :  { %1168 = vmax.xlane.f32.xlu2 %v1167_v41  ;;  %1162 = vmax.xlane.f32.xlu0 %v1161_v54  ;;  %v1164_v57 = vsel %vm1148_vm2, %v1106_v55, -inf }
 0x160   :  { %1165 = vmax.xlane.f32.xlu1 %v1164_v57 }
 0x165   :  { %v1127_v58 = vpop.f32.mrf.mxu2  ;;  %v1144_v59 = vpop.f32.mrf.mxu3 }
 0x166   :  { %v1170_v60 = vsel %vm1148_vm2, %v1144_v59, -inf  ;;  %v1108_v61 = vpop.f32.mrf.mxu1 }
 0x167   :  { %1171 = vmax.xlane.f32.xlu2 %v1170_v60 }
 0x16d   :  { %v1146_v62 = vpop.f32.mrf.mxu3 }
 0x1bb   :  { %v1151_v63 = vpop.xlane.xlu1 %1150 }
 0x1bc   :  { %v1173_v0 = vsub.f32 %v1011_v39, %v1151_v63 }
 0x1be   :  { %v1181_v1 = vmul.f32 1.442695, %v1173_v0 }
 0x1c0   :  { %2082 = vpow2.f32 %v1181_v1 }
 0x1c2   :  { %v1157_v2 = vpop.xlane.xlu0 %1156 }
 0x1c3   :  { %v1175_v3 = vsub.f32 %v1049_v42, %v1157_v2  ;;  %v1154_v4 = vpop.xlane.xlu1 %1153 }
 0x1c4   :  { %v1174_v6 = vsub.f32 %v1030_v45, %v1154_v4 }
 0x1c5   :  { %v1185_v5 = vmul.f32 1.442695, %v1175_v3 }
 0x1c6   :  { %v2083_v7 = vpop.eup %2082  ;;  %v1183_v9 = vmul.f32 1.442695, %v1174_v6 }
 0x1c7   :  { %2084 = vpow2.f32 %v1185_v5  ;;  %v1197_v8 = vsel %vm1148_vm2, %v2083_v7, 0.0 }
 0x1c8   :  { %1198 = vadd.xlane.f32.xlu1 %v1197_v8  ;;  %2086 = vpow2.f32 %v1183_v9  ;;  %v2075_v8 = vld [vmem:[%s2560_s4 + $0x8] sm:$0xff] }
 0x1ca   :  { %v1160_v10 = vpop.xlane.xlu0 %1159 }
 0x1cb   :  { %v1176_v11 = vsub.f32 %v1068_v48, %v1160_v10  ;;  %v2076_v10 = vld [vmem:[%s2560_s4 + $0x10] sm:$0xff] }
 0x1cd   :  { %v2085_v12 = vpop.eup %2084  ;;  %v1187_v13 = vmul.f32 1.442695, %v1176_v11  ;;  %v2077_v11 = vld [vmem:[%s2560_s4 + $0x18] sm:$0xff] }
 0x1ce   :  { %v1203_v14 = vsel %vm1148_vm2, %v2085_v12, 0.0  ;;  %v2087_v17 = vpop.eup %2086 }
 0x1cf   :  { %2088 = vpow2.f32 %v1187_v13  ;;  %1204 = vadd.xlane.f32.xlu2 %v1203_v14  ;;  %v1200_v25 = vsel %vm1148_vm2, %v2087_v17, 0.0 }
 0x1d2   :  { %v1169_v15 = vpop.xlane.xlu2 %1168  ;;  %v1163_v16 = vpop.xlane.xlu0 %1162 }
 0x1d3   :  { %v1179_v18 = vsub.f32 %v1125_v53, %v1169_v15  ;;  %v1177_v19 = vsub.f32 %v1087_v51, %v1163_v16  ;;  %v1166_v20 = vpop.xlane.xlu1 %1165 }
 0x1d4   :  { %v1178_v24 = vsub.f32 %v1106_v55, %v1166_v20 }
 0x1d5   :  { %v2089_v21 = vpop.eup %2088  ;;  %v1193_v22 = vmul.f32 1.442695, %v1179_v18  ;;  %v1189_v23 = vmul.f32 1.442695, %v1177_v19 }
 0x1d6   :  { %v1206_v26 = vsel %vm1148_vm2, %v2089_v21, 0.0  ;;  %v1191_v27 = vmul.f32 1.442695, %v1178_v24 }
 0x1d7   :  { %2090 = vpow2.f32 %v1193_v22  ;;  %1201 = vadd.xlane.f32.xlu2 %v1200_v25  ;;  %1207 = vadd.xlane.f32.xlu0 %v1206_v26 }
 0x1d8   :  { %2092 = vpow2.f32 %v1189_v23 }
 0x1d9   :  { %2094 = vpow2.f32 %v1191_v27 }
 0x1da   :  { %v1172_v28 = vpop.xlane.xlu2 %1171 }
 0x1db   :  { %v1180_v29 = vsub.f32 %v1144_v59, %v1172_v28 }
 0x1dd   :  { %v2091_v30 = vpop.eup %2090  ;;  %v1195_v31 = vmul.f32 1.442695, %v1180_v29 }
 0x1de   :  { %v2093_v32 = vpop.eup %2092  ;;  %v1215_v33 = vsel %vm1148_vm2, %v2091_v30, 0.0 }
 0x1df   :  { %2096 = vpow2.f32 %v1195_v31  ;;  %1216 = vadd.xlane.f32.xlu0 %v1215_v33  ;;  %v1209_v34 = vsel %vm1148_vm2, %v2093_v32, 0.0  ;;  %v2095_v35 = vpop.eup %2094 }
 0x1e0   :  { %1210 = vadd.xlane.f32.xlu2 %v1209_v34  ;;  %v1212_v38 = vsel %vm1148_vm2, %v2095_v35, 0.0 }
 0x1e5   :  { %v2097_v36 = vpop.eup %2096 }
 0x1e6   :  { %v1218_v37 = vsel %vm1148_vm2, %v2097_v36, 0.0 }
 0x1e7   :  { %1219 = vadd.xlane.f32.xlu1 %v1218_v37  ;;  %1213 = vadd.xlane.f32.xlu0 %v1212_v38 }
 0x23b   :  { %v1199_v39 = vpop.xlane.xlu1 %1198 }
 0x23c   :  { %2098 = vrcp.f32 %v1199_v39 }
 0x242   :  { %v1205_v40 = vpop.xlane.xlu2 %1204  ;;  %v2099_v42 = vpop.eup %2098 }
 0x243   :  { %2100 = vrcp.f32 %v1205_v40  ;;  %v1229_v43 = vmul.f32 %v2099_v42, %v2083_v7  ;;  %v2074_v7 = vld [vmem:[%s2560_s4] sm:$0xff] }
 0x245   :  { %v1237_v44 = vpack.c.bf16 %v1229_v43, %v1229_v43 }
 0x247   :  { %1950 = vmatmul.msk.bf16.vlgmr.msrb.gmra.mxu0 %vm1148_vm2, %v1237_v44 }
 0x248   :  { %1435 = vmatpush.bf16.msrb.mxu0 %v2074_v7 }
 0x249   :  { %v2101_v45 = vpop.eup %2100 }
 0x24a   :  { %v1231_v46 = vmul.f32 %v2101_v45, %v2085_v12  ;;  %v1202_v47 = vpop.xlane.xlu2 %1201  ;;  %v1208_v48 = vpop.xlane.xlu0 %1207 }
 0x24b   :  { %2102 = vrcp.f32 %v1202_v47 }
 0x24c   :  { %v1239_v49 = vpack.c.bf16 %v1231_v46, %v1231_v46  ;;  %2104 = vrcp.f32 %v1208_v48 }
 0x24e   :  { %1952 = vmatmul.msk.bf16.vlgmr.msrb.gmra.mxu2 %vm1148_vm2, %v1239_v49 }
 0x24f   :  { %1491 = vmatpush.bf16.msrb.mxu2 %v2076_v10 }
 0x251   :  { %v2103_v50 = vpop.eup %2102 }
 0x252   :  { %v2105_v51 = vpop.eup %2104  ;;  %v1230_v52 = vmul.f32 %v2103_v50, %v2087_v17  ;;  %v1217_v53 = vpop.xlane.xlu0 %1216 }
 0x253   :  { %v1232_v41 = vmul.f32 %v2105_v51, %v2089_v21  ;;  %v1211_v54 = vpop.xlane.xlu2 %1210  ;;  %2106 = vrcp.f32 %v1217_v53  ;;  %v2081_v53 = vld [vmem:[%s2561_s5] ss:$0 sm:$0xff]  ;;  %s2141_s5 = smov 128  }
 0x254   :  { %v1238_v55 = vpack.c.bf16 %v1230_v52, %v1230_v52  ;;  %2108 = vrcp.f32 %v1211_v54 }
 0x255   :  { %v1240_v56 = vpack.c.bf16 %v1232_v41, %v1232_v41 }
 0x256   :  { %1951 = vmatmul.msk.bf16.vlgmr.msrb.gmra.mxu1 %vm1148_vm2, %v1238_v55 }
 0x257   :  { %1953 = vmatmul.msk.bf16.vlgmr.msrb.gmra.mxu3 %vm1148_vm2, %v1240_v56  ;;  %1463 = vmatpush.bf16.msrb.mxu1 %v2075_v8 }
 0x258   :  { %1519 = vmatpush.bf16.msrb.mxu3 %v2077_v11 }
 0x259   :  { %v2107_v57 = vpop.eup %2106 }
 0x25a   :  { %v2109_v58 = vpop.eup %2108  ;;  %v1235_v59 = vmul.f32 %v2107_v57, %v2091_v30  ;;  %v1220_v60 = vpop.xlane.xlu1 %1219 }
 0x25b   :  { %v1214_v61 = vpop.xlane.xlu0 %1213  ;;  %v1233_v62 = vmul.f32 %v2109_v58, %v2093_v32  ;;  %2110 = vrcp.f32 %v1220_v60 }
 0x25c   :  { %v1243_v63 = vpack.c.bf16 %v1235_v59, %v1235_v59  ;;  %2112 = vrcp.f32 %v1214_v61 }
 0x25d   :  { %v1241_v0 = vpack.c.bf16 %v1233_v62, %v1233_v62 }
 0x25e   :  { %1956 = vmatmul.msk.bf16.vlgmr.msra.gmra.mxu2 %vm1148_vm2, %v1243_v63 }
 0x25f   :  { %1954 = vmatmul.msk.bf16.vlgmr.msra.gmra.mxu0 %vm1148_vm2, %v1241_v0 }
 0x261   :  { %v2111_v1 = vpop.eup %2110 }
 0x262   :  { %v2113_v2 = vpop.eup %2112  ;;  %v1236_v3 = vmul.f32 %v2111_v1, %v2097_v36 }
 0x263   :  { %v1234_v4 = vmul.f32 %v2113_v2, %v2095_v35 }
 0x264   :  { %v1244_v5 = vpack.c.bf16 %v1236_v3, %v1236_v3 }
 0x265   :  { %v1242_v6 = vpack.c.bf16 %v1234_v4, %v1234_v4 }
 0x267   :  { %1955 = vmatmul.msk.bf16.vlgmr.msra.gmra.mxu1 %vm1148_vm2, %v1242_v6  ;;  %1957 = vmatmul.msk.bf16.vlgmr.msra.gmra.mxu3 %vm1148_vm2, %v1244_v5 }
 0x2c4   :  { %v1261_v9 = vpop.f32.mrf.mxu0 }
 0x2c5   :  { %v1398_v14 = vpack.c.bf16 %v1261_v9, %v1261_v9 }
 0x2c7   :  { %v1416_v17 = vunpack.c.l.b16 %v1398_v14 }
 0x2cc   :  { %v1263_v12 = vpop.f32.mrf.mxu0 }
 0x2d1   :  { %v1299_v13 = vpop.f32.mrf.mxu2 }
 0x2d2   :  { %v1400_v20 = vpack.c.bf16 %v1299_v13, %v1299_v13 }
 0x2d3   :  { %v1280_v15 = vpop.f32.mrf.mxu1 }
 0x2d4   :  { %v1399_v16 = vpack.c.bf16 %v1280_v15, %v1280_v15  ;;  %v1444_v26 = vunpack.c.l.b16 %v1400_v20 }
 0x2d6   :  { %v1417_v18 = vunpack.c.l.b16 %v1399_v16 }
 0x2d8   :  { %v1418_v19 = vpack.c.b16 %v1417_v18, %v1416_v17 }
 0x2d9   :  { %v1301_v21 = vpop.f32.mrf.mxu2 }
 0x2da   :  { %v1318_v22 = vpop.f32.mrf.mxu3  ;;  %1962 = vmatmul.msk.bf16.vlgmr.msrb.gmra.mxu0 %vm995_vm0, %v1418_v19 }
 0x2db   :  { %v1401_v23 = vpack.c.bf16 %v1318_v22, %v1318_v22  ;;  %v1282_v24 = vpop.f32.mrf.mxu1 }
 0x2dc   :  { %v1337_v25 = vpop.f32.mrf.mxu0 }
 0x2dd   :  { %v1445_v27 = vunpack.c.l.b16 %v1401_v23  ;;  %v1402_v31 = vpack.c.bf16 %v1337_v25, %v1337_v25 }
 0x2df   :  { %v1446_v28 = vpack.c.b16 %v1445_v27, %v1444_v26  ;;  %v1472_v35 = vunpack.c.l.b16 %v1402_v31 }
 0x2e1   :  { %1967 = vmatmul.msk.bf16.vlgmr.msrb.gmra.mxu1 %vm995_vm0, %v1446_v28  ;;  %v1375_v29 = vpop.f32.mrf.mxu2 }
 0x2e2   :  { %v1320_v30 = vpop.f32.mrf.mxu3  ;;  %v1404_v37 = vpack.c.bf16 %v1375_v29, %v1375_v29 }
 0x2e4   :  { %v1339_v32 = vpop.f32.mrf.mxu0  ;;  %v1356_v33 = vpop.f32.mrf.mxu1  ;;  %v1500_v44 = vunpack.c.l.b16 %v1404_v37 }
 0x2e5   :  { %v1403_v34 = vpack.c.bf16 %v1356_v33, %v1356_v33 }
 0x2e7   :  { %v1473_v36 = vunpack.c.l.b16 %v1403_v34 }
 0x2e9   :  { %v1474_v38 = vpack.c.b16 %v1473_v36, %v1472_v35  ;;  %v1377_v39 = vpop.f32.mrf.mxu2 }
 0x2ea   :  { %v1394_v40 = vpop.f32.mrf.mxu3 }
 0x2eb   :  { %v1405_v42 = vpack.c.bf16 %v1394_v40, %v1394_v40  ;;  %1972 = vmatmul.msk.bf16.vlgmr.msrb.gmra.mxu2 %vm995_vm0, %v1474_v38 }
 0x2ec   :  { %v1358_v43 = vpop.f32.mrf.mxu1 }
 0x2ed   :  { %v1501_v45 = vunpack.c.l.b16 %v1405_v42 }
 0x2ef   :  { %v1502_v46 = vpack.c.b16 %v1501_v45, %v1500_v44 }
 0x2f1   :  { %1977 = vmatmul.msk.bf16.vlgmr.msrb.gmra.mxu3 %vm995_vm0, %v1502_v46 }
 0x2f2   :  { %v1396_v47 = vpop.f32.mrf.mxu3 }
 0x357   :  { %v1437_v49 = vpop.f32.mrf.mxu0 }
 0x35e   :  { %v1465_v48 = vpop.f32.mrf.mxu1 }
 0x35f   :  { %v1526_v51 = vadd.f32 %v1465_v48, %v1437_v49  ;;  %v1439_v57 = vpop.f32.mrf.mxu0 }
 0x366   :  { %v1467_v55 = vpop.f32.mrf.mxu1 }
 0x367   :  { %v1529_v59 = vadd.f32 %v1467_v55, %v1439_v57 }
 0x36e   :  { %v1493_v50 = vpop.f32.mrf.mxu2 }
 0x36f   :  { %v1527_v52 = vadd.f32 %v1526_v51, %v1493_v50 }
 0x374   :  { %v1521_v41 = vpop.f32.mrf.mxu3 }
 0x375   :  { %v1528_v54 = vadd.f32 %v1527_v52, %v1521_v41 }
 0x376   :  { %v1495_v58 = vpop.f32.mrf.mxu2 }
 0x377   :  { %v1536_v56 = vadd.f32 %v2081_v53, %v1528_v54  ;;  %v1530_v60 = vadd.f32 %v1529_v59, %v1495_v58 }
 0x379   :  { %1538 = vst [vmem:[#allocation2] sm:$0xff] %v1536_v56 }
 0x37c   :  { %v1523_v61 = vpop.f32.mrf.mxu3 }
 0x37d   :  { %v1531_v62 = vadd.f32 %v1530_v60, %v1523_v61 }
 0x37f   :  { %v1537_v63 = vadd.f32 %v2081_v53, %v1531_v62 }
 0x381   :  { %1539 = vst [vmem:[#allocation2 + $0x8] sm:$0xff] %v1537_v63 }
 0x382   :  { %1552 = dma.vmem_to_hbm [thread:$0]  %s1545_s20, 256, %s1547_s23, [#allocation3], %s2141_s5, %s2141_s5, %s2142_s24  }
 0x383   :  { %2138 = dma.done.wait [#allocation3], 256  }
 0x384   :  { %2139 = vsyncadd [#allocation3], 4294967040 }
 0x385   :  { %1557 = vsyncpa [#allocation3], 1 }

</bundles_post_ra>
